<compile_context>
chip_gen: v5e
topology: v5e:2x2
jax: 0.10.0
libtpu: 0.0.40
codegen_flags: <defaults>
</compile_context>

<pallas_src>
import functools

import jax
import jax.numpy as jnp
from jax.experimental import pallas as pl
from jax.experimental.pallas import tpu as pltpu

_LANE = 128


def _round_up(n, m):
    return (n + m - 1) // m * m


def _fcn_kernel(x_ref, w1_ref, b1_ref, w2_ref, b2_ref, w3_ref, b3_ref, out_ref):
    # Layer 1: (TB, K) @ (K, H); the 1/T mean is already folded into w1.
    h = jnp.dot(x_ref[...], w1_ref[...], preferred_element_type=jnp.float32)
    h = jnp.maximum(h + b1_ref[...], 0.0)          # bias + ReLU in f32
    # F.dropout(x, training=self.training): identity in eval mode.

    # Layer 2: Linear(H -> H//4) + ReLU   (Dropout(0.5): identity in eval)
    h2 = jnp.dot(h.astype(w2_ref.dtype), w2_ref[...],
                 preferred_element_type=jnp.float32)
    h2 = jnp.maximum(h2 + b2_ref[...], 0.0)

    # Layer 3: Linear(H//4 -> out), output dim padded to a 128-lane multiple.
    y = jnp.dot(h2.astype(w3_ref.dtype), w3_ref[...],
                preferred_element_type=jnp.float32)
    out_ref[...] = (y + b3_ref[...]).astype(out_ref.dtype)


def fcn_forward(x, params, *, tile_b=256):
    """FCN forward pass via one batch-tiled Pallas TPU kernel.

    x: (B, D_in) or (B, D_in, T) float32
    params: dict with w1 (D_in,H), b1 (1,H), w2 (H,H4), b2 (1,H4),
            w3 (H4,O), b3 (1,O)  (all float32, PyTorch-Linear semantics with
            weights stored as (in_features, out_features)).
    """
    if x.ndim == 2:
        x = x[..., None]                       # T = 1, mean is identity
    assert x.ndim == 3, "expected (B, D_in) or (B, D_in, T)"
    B, d_in, T = x.shape

    w1, b1 = params["w1"], params["b1"]
    w2, b2 = params["w2"], params["b2"]
    w3, b3 = params["w3"], params["b3"]
    H, H4, out_dim = w1.shape[1], w2.shape[1], w3.shape[1]
    assert w1.shape[0] == d_in

    cdt = jnp.bfloat16                         # MXU input dtype (f32 accumulate)

    # Fold the time-mean into layer 1:
    #   x_flat[b, d*T + t] = x[b, d, t];  w1f[d*T + t, h] = w1[d, h] / T
    K = d_in * T
    x_flat = x.reshape(B, K).astype(cdt)
    w1f = (jnp.repeat(w1, T, axis=0) / T).astype(cdt)
    w2c = w2.astype(cdt)

    # Pad the output dim to a lane-dense multiple of 128; slice back afterwards.
    n_pad = _round_up(max(out_dim, _LANE), _LANE)
    w3p = jnp.zeros((H4, n_pad), cdt).at[:, :out_dim].set(w3.astype(cdt))
    b3p = jnp.zeros((1, n_pad), jnp.float32).at[:, :out_dim].set(
        b3.astype(jnp.float32))
    b1f = b1.astype(jnp.float32)
    b2f = b2.astype(jnp.float32)

    # Batch tiling: biggest tile that divides the (padded) batch, multiple of 8.
    tb = _round_up(min(tile_b, _round_up(B, 8)), 8)
    b_pad = _round_up(B, tb)
    if b_pad != B:
        x_flat = jnp.pad(x_flat, ((0, b_pad - B), (0, 0)))
    nb = b_pad // tb

    out = pl.pallas_call(
        _fcn_kernel,
        out_shape=jax.ShapeDtypeStruct((b_pad, n_pad), jnp.float32),
        grid=(nb,),
        in_specs=[
            pl.BlockSpec((tb, K), lambda i: (i, 0)),        # x tile (pipelined)
            pl.BlockSpec((K, H), lambda i: (0, 0)),         # weights: resident
            pl.BlockSpec((1, H), lambda i: (0, 0)),
            pl.BlockSpec((H, H4), lambda i: (0, 0)),
            pl.BlockSpec((1, H4), lambda i: (0, 0)),
            pl.BlockSpec((H4, n_pad), lambda i: (0, 0)),
            pl.BlockSpec((1, n_pad), lambda i: (0, 0)),
        ],
        out_specs=pl.BlockSpec((tb, n_pad), lambda i: (i, 0)),
        compiler_params=pltpu.CompilerParams(
            dimension_semantics=("parallel",)),             # v7x: 2 TCs share batch
    )(x_flat, w1f, b1f, w2c, b2f, w3p, b3p)

    return out[:B, :out_dim]


def init_params(key, input_dim, output_dim, hidden_dim=128):
    """Deterministic parameter init (uniform, PyTorch-Linear-like bounds)."""
    h4 = hidden_dim // 4
    ks = jax.random.split(key, 6)

    def lin(kw, kb, fan_in, fan_out):
        bound = 1.0 / jnp.sqrt(fan_in)
        w = jax.random.uniform(kw, (fan_in, fan_out), jnp.float32, -bound, bound)
        b = jax.random.uniform(kb, (1, fan_out), jnp.float32, -bound, bound)
        return w, b

    w1, b1 = lin(ks[0], ks[1], input_dim, hidden_dim)
    w2, b2 = lin(ks[2], ks[3], hidden_dim, h4)
    w3, b3 = lin(ks[4], ks[5], h4, output_dim)
    return {"w1": w1, "b1": b1, "w2": w2, "b2": b2, "w3": w3, "b3": b3}


def _reference_f32(x, p):
    """Plain-JAX f32 reference of the same forward pass (eval mode)."""
    if x.ndim > 2:
        x = jnp.mean(x, axis=-1)
    h = jnp.maximum(x @ p["w1"] + p["b1"], 0.0)
    h2 = jnp.maximum(h @ p["w2"] + p["b2"], 0.0)
    return h2 @ p["w3"] + p["b3"]


if __name__ == "__main__":
    key = jax.random.PRNGKey(0)
    k_x, k_p = jax.random.split(key)

    # Small shapes: batch=64, input_dim=16, time=8 (so K = D_in*T = 128, one
    # full lane width), hidden=32, output=8.  tile_b=32 -> grid of 2 steps.
    B, D_IN, T = 64, 16, 8
    HIDDEN, OUT = 32, 8

    x = jax.random.normal(k_x, (B, D_IN, T), jnp.float32)
    params = init_params(k_p, D_IN, OUT, hidden_dim=HIDDEN)

    fwd = jax.jit(functools.partial(fcn_forward, tile_b=32))
    y = jax.block_until_ready(fwd(x, params))

    y_ref = _reference_f32(x, params)
    assert y.shape == (B, OUT), y.shape
    # bf16 MXU inputs with f32 accumulation: allow bf16-level tolerance.
    err = float(jnp.max(jnp.abs(y - y_ref)))
    assert jnp.allclose(y, y_ref, atol=3e-2, rtol=3e-2), f"max |err| = {err}"

    print("KERNEL_OK")
</pallas_src>

<mosaic_0001>
module attributes {stable_mosaic.version = 11 : i64} {
  func.func @_fcn_kernel(%arg0: i32, %arg1: memref<32x128xbf16, #tpu.memory_space<vmem>>, %arg2: memref<128x32xbf16, #tpu.memory_space<vmem>>, %arg3: memref<1x32xf32, #tpu.memory_space<vmem>>, %arg4: memref<32x8xbf16, #tpu.memory_space<vmem>>, %arg5: memref<1x8xf32, #tpu.memory_space<vmem>>, %arg6: memref<8x128xbf16, #tpu.memory_space<vmem>>, %arg7: memref<1x128xf32, #tpu.memory_space<vmem>>, %arg8: memref<32x128xf32, #tpu.memory_space<vmem>>) attributes {dimension_semantics = [#tpu.dimension_semantics<parallel>], iteration_bounds = array<i64: 2>, scalar_prefetch = 0 : i64, scratch_operands = 0 : i64, tpu.core_type = #tpu.core_type<tc>, window_params = [{transform_indices = @transform_0, window_bounds = array<i64: 32, 128>}, {pipeline_mode = #tpu.pipeline_mode<synchronous>, transform_indices = @transform_1, window_bounds = array<i64: 128, 32>}, {pipeline_mode = #tpu.pipeline_mode<synchronous>, transform_indices = @transform_2, window_bounds = array<i64: 1, 32>}, {pipeline_mode = #tpu.pipeline_mode<synchronous>, transform_indices = @transform_3, window_bounds = array<i64: 32, 8>}, {pipeline_mode = #tpu.pipeline_mode<synchronous>, transform_indices = @transform_4, window_bounds = array<i64: 1, 8>}, {pipeline_mode = #tpu.pipeline_mode<synchronous>, transform_indices = @transform_5, window_bounds = array<i64: 8, 128>}, {pipeline_mode = #tpu.pipeline_mode<synchronous>, transform_indices = @transform_6, window_bounds = array<i64: 1, 128>}, {transform_indices = @transform_7, window_bounds = array<i64: 32, 128>}]} {
    %c0 = arith.constant 0 : index
    %c0_0 = arith.constant 0 : index
    %0 = vector.load %arg1[%c0, %c0_0] : memref<32x128xbf16, #tpu.memory_space<vmem>>, vector<32x128xbf16>
    %c0_1 = arith.constant 0 : index
    %c0_2 = arith.constant 0 : index
    %1 = vector.load %arg2[%c0_1, %c0_2] : memref<128x32xbf16, #tpu.memory_space<vmem>>, vector<128x32xbf16>
    %cst = arith.constant dense<0.000000e+00> : vector<32x32xf32>
    %2 = tpu.matmul %0, %1, %cst {dimension_numbers = #tpu.dot_dimension_numbers<[1], [0], [0], [1], [0, 0, 1, 1], [], []>} : vector<32x128xbf16>, vector<128x32xbf16>, vector<32x32xf32> -> vector<32x32xf32>
    %c0_3 = arith.constant 0 : index
    %c0_4 = arith.constant 0 : index
    %3 = vector.load %arg3[%c0_3, %c0_4] : memref<1x32xf32, #tpu.memory_space<vmem>>, vector<1x32xf32>
    %4 = vector.broadcast %3 : vector<1x32xf32> to vector<32x32xf32>
    %5 = arith.addf %2, %4 : vector<32x32xf32>
    %cst_5 = arith.constant 0.000000e+00 : f32
    %6 = vector.broadcast %cst_5 : f32 to vector<32x32xf32>
    %7 = arith.maximumf %5, %6 : vector<32x32xf32>
    %8 = arith.truncf %7 : vector<32x32xf32> to vector<32x32xbf16>
    %c0_6 = arith.constant 0 : index
    %c0_7 = arith.constant 0 : index
    %9 = vector.load %arg4[%c0_6, %c0_7] : memref<32x8xbf16, #tpu.memory_space<vmem>>, vector<32x8xbf16>
    %cst_8 = arith.constant dense<0.000000e+00> : vector<32x8xf32>
    %10 = tpu.matmul %8, %9, %cst_8 {dimension_numbers = #tpu.dot_dimension_numbers<[1], [0], [0], [1], [0, 0, 1, 1], [], []>} : vector<32x32xbf16>, vector<32x8xbf16>, vector<32x8xf32> -> vector<32x8xf32>
    %c0_9 = arith.constant 0 : index
    %c0_10 = arith.constant 0 : index
    %11 = vector.load %arg5[%c0_9, %c0_10] : memref<1x8xf32, #tpu.memory_space<vmem>>, vector<1x8xf32>
    %12 = vector.broadcast %11 : vector<1x8xf32> to vector<32x8xf32>
    %13 = arith.addf %10, %12 : vector<32x8xf32>
    %cst_11 = arith.constant 0.000000e+00 : f32
    %14 = vector.broadcast %cst_11 : f32 to vector<32x8xf32>
    %15 = arith.maximumf %13, %14 : vector<32x8xf32>
    %16 = arith.truncf %15 : vector<32x8xf32> to vector<32x8xbf16>
    %c0_12 = arith.constant 0 : index
    %c0_13 = arith.constant 0 : index
    %17 = vector.load %arg6[%c0_12, %c0_13] : memref<8x128xbf16, #tpu.memory_space<vmem>>, vector<8x128xbf16>
    %cst_14 = arith.constant dense<0.000000e+00> : vector<32x128xf32>
    %18 = tpu.matmul %16, %17, %cst_14 {dimension_numbers = #tpu.dot_dimension_numbers<[1], [0], [0], [1], [0, 0, 1, 1], [], []>} : vector<32x8xbf16>, vector<8x128xbf16>, vector<32x128xf32> -> vector<32x128xf32>
    %c0_15 = arith.constant 0 : index
    %c0_16 = arith.constant 0 : index
    %19 = vector.load %arg7[%c0_15, %c0_16] : memref<1x128xf32, #tpu.memory_space<vmem>>, vector<1x128xf32>
    %20 = vector.broadcast %19 : vector<1x128xf32> to vector<32x128xf32>
    %21 = arith.addf %18, %20 : vector<32x128xf32>
    %c0_17 = arith.constant 0 : index
    %c0_18 = arith.constant 0 : index
    %22 = vector.load %arg8[%c0_17, %c0_18] : memref<32x128xf32, #tpu.memory_space<vmem>>, vector<32x128xf32>
    tpu.vector_store %arg8[%c0_17, %c0_18], %21 {strides = array<i32>} : memref<32x128xf32, #tpu.memory_space<vmem>>, vector<32x128xf32>,
    return
  }
  func.func @transform_0(%arg0: i32) -> (i32, i32) {
    %c0_i32 = arith.constant 0 : i32
    %c0_i32_0 = arith.constant 0 : i32
    return %arg0, %c0_i32 : i32, i32
  }
  func.func @transform_1(%arg0: i32) -> (i32, i32) {
    %c0_i32 = arith.constant 0 : i32
    %c0_i32_0 = arith.constant 0 : i32
    %c0_i32_1 = arith.constant 0 : i32
    return %c0_i32, %c0_i32_0 : i32, i32
  }
  func.func @transform_2(%arg0: i32) -> (i32, i32) {
    %c0_i32 = arith.constant 0 : i32
    %c0_i32_0 = arith.constant 0 : i32
    %c0_i32_1 = arith.constant 0 : i32
    return %c0_i32, %c0_i32_0 : i32, i32
  }
  func.func @transform_3(%arg0: i32) -> (i32, i32) {
    %c0_i32 = arith.constant 0 : i32
    %c0_i32_0 = arith.constant 0 : i32
    %c0_i32_1 = arith.constant 0 : i32
    return %c0_i32, %c0_i32_0 : i32, i32
  }
  func.func @transform_4(%arg0: i32) -> (i32, i32) {
    %c0_i32 = arith.constant 0 : i32
    %c0_i32_0 = arith.constant 0 : i32
    %c0_i32_1 = arith.constant 0 : i32
    return %c0_i32, %c0_i32_0 : i32, i32
  }
  func.func @transform_5(%arg0: i32) -> (i32, i32) {
    %c0_i32 = arith.constant 0 : i32
    %c0_i32_0 = arith.constant 0 : i32
    %c0_i32_1 = arith.constant 0 : i32
    return %c0_i32, %c0_i32_0 : i32, i32
  }
  func.func @transform_6(%arg0: i32) -> (i32, i32) {
    %c0_i32 = arith.constant 0 : i32
    %c0_i32_0 = arith.constant 0 : i32
    %c0_i32_1 = arith.constant 0 : i32
    return %c0_i32, %c0_i32_0 : i32, i32
  }
  func.func @transform_7(%arg0: i32) -> (i32, i32) {
    %c0_i32 = arith.constant 0 : i32
    %c0_i32_0 = arith.constant 0 : i32
    return %arg0, %c0_i32 : i32, i32
  }
}

</mosaic_0001>

<bundles_post_ra>
// kernel: fcn_forward.1
= control target key start
LH: loop header
LB: loop body
LE: loop exit
PB: predicated region body
PF: predicated region fallthrough
CT: control target
= control target key end

     0   :  { %s681_s24 = smov 0   ;;  %s744_s0 = inlined_call_operand.vmem [shape: bf16[64,128], index: 0, kind: input, shape index: {}]   ;;  %s745_s1 = inlined_call_operand.vmem [shape: bf16[128,32], index: 1, kind: input, shape index: {}]   ;;  %s746_s2 = inlined_call_operand.vmem [shape: f32[1,32], index: 2, kind: input, shape index: {}]   ;;  %s747_s3 = inlined_call_operand.vmem [shape: bf16[32,8], index: 3, kind: input, shape index: {}]   ;;  %s748_s4 = inlined_call_operand.vmem [shape: f32[1,8], index: 4, kind: input, shape index: {}]   ;;  %s749_s5 = inlined_call_operand.vmem [shape: bf16[8,128], index: 5, kind: input, shape index: {}]   ;;  %s750_s6 = inlined_call_operand.vmem [shape: f32[1,128], index: 6, kind: input, shape index: {}]   ;;  %s751_s7 = inlined_call_operand.vmem [shape: f32[64,128], index: 7, kind: output, shape index: {}]  }
   0x1 LB: > { %s539_s25 = sadd.s32 4294967295, %s639_s24   ;;  %p543_p0 = scmp.ge.s32.totalorder %s639_s24, 1  ;;  %s639_s24 = sphi %s681_s24, %s17_s24  }
   0x2   : > { %p238_p1 = scmp.lt.s32.totalorder %s639_s24, 3 }
   0x4   : > { %p239_p2 = pnand %p543_p0, %p238_p1 }
   0x5   : > { %s544_s11 = sshll.u32 (!%p239_p2), %s539_s25, 2 }
   0x6   : > { %242 = sbr.rel (%p239_p2) target bundleno = 482 (0x1e2), region = 48  ;;  %p271_p3 = scmp.lt.s32.totalorder (!%p239_p2), %s544_s11, 7 }
   0xb   : > { %v611_v0 = vld [vmem:[%s745_s1 + $0x38] sm:$0xff]  ;;  %v610_v1 = vld [vmem:[%s745_s1 + $0x30] sm:$0xff]  ;;  %v609_v2 = vld [vmem:[%s745_s1 + $0x28] sm:$0xff]  ;;  %s753_s11 = smov (!%p271_p3, %s544_s11), 7  ;;  %vm412_vm0 = vcmask 261120   ;;  %vm456_vm1 = vcmask 1043456  }
   0xc   : > { %367 = vmatpush.bf16.msra.mxu0 %v611_v0  ;;  %614 = vmatpush.bf16.msra.mxu3 %v611_v0  ;;  %v608_v3 = vld [vmem:[%s745_s1 + $0x20] sm:$0xff]  ;;  %v607_v4 = vld [vmem:[%s745_s1 + $0x18] sm:$0xff]  ;;  %v606_v5 = vld [vmem:[%s745_s1 + $0x10] sm:$0xff]  ;;  %s545_s18 = sshll.u32 %s753_s11, 2  ;;  %vm449_vm2 = vcmask 64512   ;;  %s547_s13 = sshll.u32 %s753_s11, 3 }
   0xd   : > { %v605_v6 = vld [vmem:[%s745_s1 + $0x8] sm:$0xff]  ;;  %v604_v7 = vld [vmem:[%s745_s1] sm:$0xff]  ;;  %s274_s23 = scalar_lea.vmem %s744_s0, %s545_s18  ;;  %s280_s18 = scalar_lea.vmem %s751_s7, %s547_s13 }
   0xe   : > { %v602_v8 = vld [vmem:[%s274_s23] sm:$0xff]  ;;  %v603_v9 = vld [vmem:[%s274_s23 + $0x8] sm:$0xff] }
   0xf   : > { %v613_v10 = vld [vmem:[%s747_s3 + $0x8] sm:$0xff]  ;;  %v612_v11 = vld [vmem:[%s747_s3] sm:$0xff] }
  0x10   : > { %368 = vmatpush.bf16.msra.mxu0 %v610_v1  ;;  %615 = vmatpush.bf16.msra.mxu3 %v610_v1  ;;  %v630_v13 = vld [vmem:[%s746_s2] ss:$0 sm:$0xff] }
  0x11   : > { %425 = vmatpush.bf16.msra.mxu1 %v613_v10  ;;  %v444_v27 = vld [vmem:[%s749_s5] sm:$0xf] }
  0x12   : > { %v458_v28 = vsel %vm456_vm1, %v444_v27, 0  ;;  %v631_v30 = vld [vmem:[%s748_s4] ss:$0 sm:$0xff] }
  0x13   : > { %467 = vmatpush.bf16.msra.mxu2 %v458_v28  ;;  %v632_v44 = vld [vmem:[%s750_s6] ss:$0 sm:$0xff] }
  0x14   : > { %369 = vmatpush.bf16.msra.mxu0 %v609_v2  ;;  %616 = vmatpush.bf16.msra.mxu3 %v609_v2 }
  0x15   : > { %426 = vmatpush.bf16.msra.mxu1 %v612_v11 }
  0x18   : > { %370 = vmatpush.bf16.msra.mxu0 %v608_v3  ;;  %617 = vmatpush.bf16.msra.mxu3 %v608_v3 }
  0x1c   : > { %371 = vmatpush.bf16.msra.mxu0 %v607_v4  ;;  %618 = vmatpush.bf16.msra.mxu3 %v607_v4 }
  0x20   : > { %372 = vmatpush.bf16.msra.mxu0 %v606_v5  ;;  %619 = vmatpush.bf16.msra.mxu3 %v606_v5 }
  0x24   : > { %373 = vmatpush.bf16.msra.mxu0 %v605_v6  ;;  %620 = vmatpush.bf16.msra.mxu3 %v605_v6 }
  0x28   : > { %374 = vmatpush.bf16.msra.mxu0 %v604_v7  ;;  %621 = vmatpush.bf16.msra.mxu3 %v604_v7 }
  0x2b   : > { %375 = vmatmul.bf16.vlgmr.msra.gmra.mxu0 %v602_v8  ;;  %380 = vmatmul.bf16.vlgmr.msra.gmra.mxu3 %v603_v9 }
  0xa8   : > { %v376_v12 = vpop.f32.mrf.mxu0 }
  0xa9   : > { %v377_v14 = vadd.f32 %v630_v13, %v376_v12 }
  0xab   : > { %v386_v18 = vmax.f32 %v377_v14, 0.0 }
  0xae   : > { %v381_v16 = vpop.f32.mrf.mxu3 }
  0xaf   : > { %v382_v22 = vadd.f32 %v630_v13, %v381_v16 }
  0xb0   : > { %v378_v15 = vpop.f32.mrf.mxu0 }
  0xb1   : > { %v379_v17 = vadd.f32 %v630_v13, %v378_v15  ;;  %v388_v24 = vmax.f32 %v382_v22, 0.0 }
  0xb3   : > { %v387_v19 = vmax.f32 %v379_v17, 0.0 }
  0xb5   : > { %v390_v20 = vpack.c.bf16 %v387_v19, %v386_v18 }
  0xb6   : > { %v383_v21 = vpop.f32.mrf.mxu3 }
  0xb7   : > { %596 = vmatmul.msk.bf16.vlgmr.msra.gmra.mxu1 %vm412_vm0, %v390_v20  ;;  %v384_v23 = vadd.f32 %v630_v13, %v383_v21 }
  0xb9   : > { %v389_v25 = vmax.f32 %v384_v23, 0.0 }
  0xbb   : > { %v391_v26 = vpack.c.bf16 %v389_v25, %v388_v24 }
  0xc7   : > { %597 = vmatmul.msk.bf16.gmra.mxu1 %vm412_vm0, %v391_v26 }
 0x134   : > { %v428_v29 = vpop.f32.mrf.mxu1 }
 0x135   : > { %v429_v31 = vadd.f32 %v631_v30, %v428_v29 }
 0x137   : > { %v438_v34 = vmax.f32 %v429_v31, 0.0 }
 0x13c   : > { %v430_v32 = vpop.f32.mrf.mxu1 }
 0x13d   : > { %v431_v33 = vadd.f32 %v631_v30, %v430_v32 }
 0x13f   : > { %v439_v35 = vmax.f32 %v431_v33, 0.0 }
 0x141   : > { %v442_v36 = vpack.c.bf16 %v439_v35, %v438_v34 }
 0x143   : > { %598 = vmatmul.msk.bf16.vlgmr.msra.gmra.mxu2 %vm449_vm2, %v442_v36 }
 0x144   : > { %v433_v37 = vpop.f32.mrf.mxu1 }
 0x145   : > { %v434_v38 = vadd.f32 %v631_v30, %v433_v37 }
 0x147   : > { %v440_v41 = vmax.f32 %v434_v38, 0.0 }
 0x14c   : > { %v435_v39 = vpop.f32.mrf.mxu1 }
 0x14d   : > { %v436_v40 = vadd.f32 %v631_v30, %v435_v39 }
 0x14f   : > { %v441_v42 = vmax.f32 %v436_v40, 0.0 }
 0x151   : > { %v443_v43 = vpack.c.bf16 %v441_v42, %v440_v41 }
 0x153   : > { %599 = vmatmul.msk.bf16.gmra.mxu2 %vm449_vm2, %v443_v43 }
 0x1c6   : > { %v469_v45 = vpop.f32.mrf.mxu2 }
 0x1c7   : > { %v470_v46 = vadd.f32 %v632_v44, %v469_v45 }
 0x1c9   : > { %479 = vst [vmem:[%s280_s18] sm:$0xff] %v470_v46 }
 0x1ce   : > { %v471_v47 = vpop.f32.mrf.mxu2 }
 0x1cf   : > { %v472_v48 = vadd.f32 %v632_v44, %v471_v47 }
 0x1d1   : > { %480 = vst [vmem:[%s280_s18 + $0x8] sm:$0xff] %v472_v48 }
 0x1d6   : > { %v474_v49 = vpop.f32.mrf.mxu2 }
 0x1d7   : > { %v475_v50 = vadd.f32 %v632_v44, %v474_v49 }
 0x1d9   : > { %481 = vst [vmem:[%s280_s18 + $0x10] sm:$0xff] %v475_v50 }
 0x1de   : > { %v476_v51 = vpop.f32.mrf.mxu2 }
 0x1df   : > { %v477_v52 = vadd.f32 %v632_v44, %v476_v51 }
 0x1e1   : > { %482 = vst [vmem:[%s280_s18 + $0x18] sm:$0xff] %v477_v52 }
 0x1e2 PF: > { %s17_s24 = sadd.s32 1, %s639_s24  }
 0x1e3   : > { %p14_p4 = scmp.ge.s32.totalorder %s17_s24, 4  }
 0x1e5   :  { %16 = sbr.rel (!%p14_p4) target bundleno = 1 (0x1), region = 78 }

</bundles_post_ra>
